<compile_context>
chip_gen: v7x
topology: tpu7x:2x2x1
jax: 0.10.0
libtpu: 0.0.40
codegen_flags: <defaults>
</compile_context>

<pallas_src>
import functools

import jax
import jax.numpy as jnp
from jax import lax
from jax.experimental import pallas as pl
from jax.experimental.pallas import tpu as pltpu


def _round_up(x, m):
    return -(-x // m) * m


def _mlp_kernel(x_ref, w1_ref, b1_ref, w2_ref, b2_ref, w3t_ref, b3_ref, o_ref,
                *, chunk, n_chunks):
    # Weights/biases are tiny and resident; load once per grid step.
    w1 = w1_ref[...]
    b1 = b1_ref[...]
    w2 = w2_ref[...]
    b2 = b2_ref[...]
    w3t = w3t_ref[...]
    b3 = b3_ref[0, 0]

    # Sub-tile the batch so the 128-lane-padded h1/h2 temporaries stay ~256 KiB
    # regardless of how large the grid tile (and its x double buffer) grows.
    @pl.loop(0, n_chunks)
    def _(c):
        start = pl.multiple_of(c * chunk, chunk)
        x = x_ref[pl.ds(start, chunk), :]                               # (chunk, D)

        # Layer 1: Linear(D, 32) + ReLU  (MXU matmul, f32 accumulation)
        h1 = jnp.dot(x, w1, preferred_element_type=jnp.float32) + b1
        h1 = jnp.maximum(h1, 0.0)

        # Layer 2: Linear(32, 16) + ReLU
        h2 = jnp.dot(h1, w2, preferred_element_type=jnp.float32) + b2
        h2 = jnp.maximum(h2, 0.0)

        # Layer 3: Linear(16, 1), computed transposed so the result is a lane-dense
        # (1, chunk) row straight from the MXU (no masked column store).
        logit = lax.dot_general(
            w3t, h2, (((1,), (1,)), ((), ())),
            preferred_element_type=jnp.float32,
        ) + b3                                                          # (1, chunk)

        # Exact sigmoid via a single EUP tanh: sigmoid(x) = 0.5*(tanh(x/2)+1).
        sig = 0.5 * (jnp.tanh(0.5 * logit) + 1.0)
        o_ref[0, :, pl.ds(start, chunk)] = sig.astype(o_ref.dtype)


def _pick_tile_b(batch, input_dim, dtype_bytes):
    """Batch-tile size with lane-padded VMEM accounting for the x double buffer."""
    d_pad = _round_up(input_dim, 128)               # lanes are 128-wide in VMEM
    row_bytes = d_pad * dtype_bytes
    x_budget = 24 << 20                             # bytes for the 2x-buffered x tiles
    tile = (x_budget // (2 * row_bytes)) // 128 * 128
    tile = max(128, min(16384, tile))
    if batch > 128:
        # Keep at least 2 grid steps so both v7x TensorCores get work ("parallel").
        tile = min(tile, _round_up(_round_up(batch, 2) // 2, 128))
    # Never bigger than needed to cover the whole batch.
    tile = min(tile, _round_up(batch, 128))
    return tile


def _pick_chunk(tile_b):
    """Largest inner sub-tile <= 512 rows that divides the grid tile."""
    for c in (512, 384, 256, 128):
        if c <= tile_b and tile_b % c == 0:
            return c
    return tile_b


def anomaly_detector_forward(x, params):
    """x: (B, input_dim). Returns (B, 1) float32 sigmoid scores."""
    w1, b1, w2, b2, w3, b3 = params
    B, D = x.shape

    tile_b = _pick_tile_b(B, D, x.dtype.itemsize)
    chunk = _pick_chunk(tile_b)
    n_chunks = tile_b // chunk
    num_tiles = pl.cdiv(B, tile_b)                  # ragged last block; no jnp.pad copy

    w3t = w3.T                                      # (1, 16) -> lane-dense final layer
    b3s = b3.reshape(1, 1)                          # scalar bias, lives in SMEM

    # Explicit scoped-VMEM budget from the real (lane-padded) footprint:
    #   x double buffer + output double buffer + in-loop temporaries + weights/slack.
    d_pad = _round_up(D, 128)
    footprint = (2 * tile_b * d_pad * x.dtype.itemsize
                 + 2 * 8 * tile_b * 4
                 + 6 * chunk * 128 * 4
                 + (1 << 20))
    vmem_limit = max(32 << 20, min(64 << 20, footprint + (8 << 20)))

    flops = 2 * B * (D * 32 + 32 * 16 + 16 * 1)
    bytes_accessed = B * D * x.dtype.itemsize + B * 4 + (D * 32 + 32 * 16 + 16 + 49) * 4

    const = lambda i: (0, 0)
    kernel = functools.partial(_mlp_kernel, chunk=chunk, n_chunks=n_chunks)

    out = pl.pallas_call(
        kernel,
        out_shape=jax.ShapeDtypeStruct((num_tiles, 1, tile_b), jnp.float32),
        grid=(num_tiles,),
        in_specs=[
            pl.BlockSpec((tile_b, D), lambda i: (i, 0)),   # x streamed per batch tile
            pl.BlockSpec(w1.shape, const),                 # weights/biases stay resident
            pl.BlockSpec(b1.shape, const),
            pl.BlockSpec(w2.shape, const),
            pl.BlockSpec(b2.shape, const),
            pl.BlockSpec(w3t.shape, const),
            pl.BlockSpec(memory_space=pltpu.SMEM),         # scalar b3
        ],
        out_specs=pl.BlockSpec((1, 1, tile_b), lambda i: (i, 0, 0)),
        compiler_params=pltpu.CompilerParams(
            dimension_semantics=("parallel",),             # megacore split on v7x
            vmem_limit_bytes=int(vmem_limit),
        ),
        cost_estimate=pl.CostEstimate(
            flops=int(flops),
            transcendentals=int(B),
            bytes_accessed=int(bytes_accessed),
        ),
    )(x, w1, b1, w2, b2, w3t, b3s)

    # (num_tiles, 1, tile_b) -> (num_tiles*tile_b, 1); drop ragged-edge garbage rows.
    return out.reshape(num_tiles * tile_b, 1)[:B]


def init_params(input_dim, key):
    """Deterministic init matching PyTorch nn.Linear default (uniform +/- 1/sqrt(fan_in)).
    Weights stored transposed relative to torch: (in_features, out_features)."""
    ks = jax.random.split(key, 6)

    def linear(kw, kb, fan_in, fan_out):
        bound = 1.0 / jnp.sqrt(fan_in)
        w = jax.random.uniform(kw, (fan_in, fan_out), jnp.float32, -bound, bound)
        b = jax.random.uniform(kb, (1, fan_out), jnp.float32, -bound, bound)
        return w, b

    w1, b1 = linear(ks[0], ks[1], input_dim, 32)
    w2, b2 = linear(ks[2], ks[3], 32, 16)
    w3, b3 = linear(ks[4], ks[5], 16, 1)
    return (w1, b1, w2, b2, w3, b3)


if __name__ == "__main__":
    key = jax.random.PRNGKey(0)
    k_x, k_p = jax.random.split(key)

    batch, input_dim = 10, 32          # batch deliberately NOT a multiple of 8 -> ragged path
    x = jax.random.normal(k_x, (batch, input_dim), jnp.float32)
    params = init_params(input_dim, k_p)

    out = anomaly_detector_forward(x, params)
    jax.block_until_ready(out)

    # Reference check in plain JAX (same math, same params).
    w1, b1, w2, b2, w3, b3 = params
    h = jnp.maximum(x @ w1 + b1, 0.0)
    h = jnp.maximum(h @ w2 + b2, 0.0)
    ref = jax.nn.sigmoid(h @ w3 + b3)

    assert out.shape == (batch, 1)
    assert jnp.allclose(out, ref, atol=1e-5), "mismatch vs reference"

    print("KERNEL_OK")
</pallas_src>

<mosaic_0001>
module attributes {stable_mosaic.version = 11 : i64} {
  func.func @_mlp_kernel(%arg0: i32, %arg1: memref<128x32xf32, #tpu.memory_space<vmem>>, %arg2: memref<32x32xf32, #tpu.memory_space<vmem>>, %arg3: memref<1x32xf32, #tpu.memory_space<vmem>>, %arg4: memref<32x16xf32, #tpu.memory_space<vmem>>, %arg5: memref<1x16xf32, #tpu.memory_space<vmem>>, %arg6: memref<1x16xf32, #tpu.memory_space<vmem>>, %arg7: memref<1x1xf32, #tpu.memory_space<smem>>, %arg8: memref<1x1x128xf32, #tpu.memory_space<vmem>>) attributes {dimension_semantics = [#tpu.dimension_semantics<parallel>], iteration_bounds = array<i64: 1>, scalar_prefetch = 0 : i64, scratch_operands = 0 : i64, tpu.core_type = #tpu.core_type<tc>, window_params = [{transform_indices = @transform_0, window_bounds = array<i64: 128, 32>}, {pipeline_mode = #tpu.pipeline_mode<synchronous>, transform_indices = @transform_1, window_bounds = array<i64: 32, 32>}, {pipeline_mode = #tpu.pipeline_mode<synchronous>, transform_indices = @transform_2, window_bounds = array<i64: 1, 32>}, {pipeline_mode = #tpu.pipeline_mode<synchronous>, transform_indices = @transform_3, window_bounds = array<i64: 32, 16>}, {pipeline_mode = #tpu.pipeline_mode<synchronous>, transform_indices = @transform_4, window_bounds = array<i64: 1, 16>}, {pipeline_mode = #tpu.pipeline_mode<synchronous>, transform_indices = @transform_5, window_bounds = array<i64: 1, 16>}, {transform_indices = @transform_6, window_bounds = array<i64: 1, 1>}, {transform_indices = @transform_7, window_bounds = array<i64: 1, 1, 128>}]} {
    %c0 = arith.constant 0 : index
    %c0_0 = arith.constant 0 : index
    %0 = vector.load %arg2[%c0, %c0_0] : memref<32x32xf32, #tpu.memory_space<vmem>>, vector<32x32xf32>
    %c0_1 = arith.constant 0 : index
    %c0_2 = arith.constant 0 : index
    %1 = vector.load %arg3[%c0_1, %c0_2] : memref<1x32xf32, #tpu.memory_space<vmem>>, vector<1x32xf32>
    %c0_3 = arith.constant 0 : index
    %c0_4 = arith.constant 0 : index
    %2 = vector.load %arg4[%c0_3, %c0_4] : memref<32x16xf32, #tpu.memory_space<vmem>>, vector<32x16xf32>
    %c0_5 = arith.constant 0 : index
    %c0_6 = arith.constant 0 : index
    %3 = vector.load %arg5[%c0_5, %c0_6] : memref<1x16xf32, #tpu.memory_space<vmem>>, vector<1x16xf32>
    %c0_7 = arith.constant 0 : index
    %c0_8 = arith.constant 0 : index
    %4 = vector.load %arg6[%c0_7, %c0_8] : memref<1x16xf32, #tpu.memory_space<vmem>>, vector<1x16xf32>
    %c0_9 = arith.constant 0 : index
    %c0_10 = arith.constant 0 : index
    %5 = memref.load %arg7[%c0_9, %c0_10] : memref<1x1xf32, #tpu.memory_space<smem>>
    %c0_i32 = arith.constant 0 : i32
    %c1_i32 = arith.constant 1 : i32
    %6 = arith.muli %c0_i32, %c1_i32 : i32
    %c0_i32_11 = arith.constant 0 : i32
    %7 = arith.addi %c0_i32_11, %6 : i32
    %c128_i32 = arith.constant 128 : i32
    %8 = arith.muli %7, %c128_i32 : i32
    %9 = tpu.assume_multiple %8, 128 : i32
    %10 = arith.index_cast %9 : i32 to index
    %c0_12 = arith.constant 0 : index
    %11 = vector.load %arg1[%10, %c0_12] : memref<128x32xf32, #tpu.memory_space<vmem>>, vector<128x32xf32>
    %cst = arith.constant dense<0.000000e+00> : vector<128x32xf32>
    %12 = tpu.matmul %11, %0, %cst {dimension_numbers = #tpu.dot_dimension_numbers<[1], [0], [0], [1], [0, 0, 1, 1], [], []>} : vector<128x32xf32>, vector<32x32xf32>, vector<128x32xf32> -> vector<128x32xf32>
    %13 = vector.broadcast %1 : vector<1x32xf32> to vector<128x32xf32>
    %14 = arith.addf %12, %13 : vector<128x32xf32>
    %cst_13 = arith.constant 0.000000e+00 : f32
    %15 = vector.broadcast %cst_13 : f32 to vector<128x32xf32>
    %16 = arith.maximumf %14, %15 : vector<128x32xf32>
    %cst_14 = arith.constant dense<0.000000e+00> : vector<128x16xf32>
    %17 = tpu.matmul %16, %2, %cst_14 {dimension_numbers = #tpu.dot_dimension_numbers<[1], [0], [0], [1], [0, 0, 1, 1], [], []>} : vector<128x32xf32>, vector<32x16xf32>, vector<128x16xf32> -> vector<128x16xf32>
    %18 = vector.broadcast %3 : vector<1x16xf32> to vector<128x16xf32>
    %19 = arith.addf %17, %18 : vector<128x16xf32>
    %cst_15 = arith.constant 0.000000e+00 : f32
    %20 = vector.broadcast %cst_15 : f32 to vector<128x16xf32>
    %21 = arith.maximumf %19, %20 : vector<128x16xf32>
    %cst_16 = arith.constant dense<0.000000e+00> : vector<1x128xf32>
    %22 = tpu.matmul %4, %21, %cst_16 {dimension_numbers = #tpu.dot_dimension_numbers<[1], [1], [0], [0], [0, 0, 1, 0], [], []>} : vector<1x16xf32>, vector<128x16xf32>, vector<1x128xf32> -> vector<1x128xf32>
    %23 = vector.broadcast %5 : f32 to vector<1x128xf32>
    %24 = arith.addf %22, %23 : vector<1x128xf32>
    %cst_17 = arith.constant 5.000000e-01 : f32
    %25 = vector.broadcast %cst_17 : f32 to vector<1x128xf32>
    %26 = arith.mulf %25, %24 : vector<1x128xf32>
    %27 = math.tanh %26 : vector<1x128xf32>
    %cst_18 = arith.constant 1.000000e+00 : f32
    %28 = vector.broadcast %cst_18 : f32 to vector<1x128xf32>
    %29 = arith.addf %27, %28 : vector<1x128xf32>
    %cst_19 = arith.constant 5.000000e-01 : f32
    %30 = vector.broadcast %cst_19 : f32 to vector<1x128xf32>
    %31 = arith.mulf %30, %29 : vector<1x128xf32>
    %c0_20 = arith.constant 0 : index
    %c0_21 = arith.constant 0 : index
    %32 = arith.index_cast %9 : i32 to index
    %33 = vector.load %arg8[%c0_20, %c0_21, %32] : memref<1x1x128xf32, #tpu.memory_space<vmem>>, vector<1x1x128xf32>
    %34 = vector.shape_cast %33 : vector<1x1x128xf32> to vector<1x128xf32>
    %35 = vector.shape_cast %31 : vector<1x128xf32> to vector<1x1x128xf32>
    tpu.vector_store %arg8[%c0_20, %c0_21, %32], %35 {strides = array<i32>} : memref<1x1x128xf32, #tpu.memory_space<vmem>>, vector<1x1x128xf32>,
    %c1_i32_22 = arith.constant 1 : i32
    return
  }
  func.func @transform_0(%arg0: i32) -> (i32, i32) {
    %c0_i32 = arith.constant 0 : i32
    %c0_i32_0 = arith.constant 0 : i32
    return %arg0, %c0_i32 : i32, i32
  }
  func.func @transform_1(%arg0: i32) -> (i32, i32) {
    %c0_i32 = arith.constant 0 : i32
    %c0_i32_0 = arith.constant 0 : i32
    %c0_i32_1 = arith.constant 0 : i32
    return %c0_i32, %c0_i32_0 : i32, i32
  }
  func.func @transform_2(%arg0: i32) -> (i32, i32) {
    %c0_i32 = arith.constant 0 : i32
    %c0_i32_0 = arith.constant 0 : i32
    %c0_i32_1 = arith.constant 0 : i32
    return %c0_i32, %c0_i32_0 : i32, i32
  }
  func.func @transform_3(%arg0: i32) -> (i32, i32) {
    %c0_i32 = arith.constant 0 : i32
    %c0_i32_0 = arith.constant 0 : i32
    %c0_i32_1 = arith.constant 0 : i32
    return %c0_i32, %c0_i32_0 : i32, i32
  }
  func.func @transform_4(%arg0: i32) -> (i32, i32) {
    %c0_i32 = arith.constant 0 : i32
    %c0_i32_0 = arith.constant 0 : i32
    %c0_i32_1 = arith.constant 0 : i32
    return %c0_i32, %c0_i32_0 : i32, i32
  }
  func.func @transform_5(%arg0: i32) -> (i32, i32) {
    %c0_i32 = arith.constant 0 : i32
    %c0_i32_0 = arith.constant 0 : i32
    %c0_i32_1 = arith.constant 0 : i32
    return %c0_i32, %c0_i32_0 : i32, i32
  }
  func.func @transform_6(%arg0: i32) -> (i32, i32) {
    %c0_i32 = arith.constant 0 : i32
    %c0_i32_0 = arith.constant 0 : i32
    %c0_i32_1 = arith.constant 0 : i32
    return %c0_i32, %c0_i32_0 : i32, i32
  }
  func.func @transform_7(%arg0: i32) -> (i32, i32, i32) {
    %c0_i32 = arith.constant 0 : i32
    %c0_i32_0 = arith.constant 0 : i32
    %c0_i32_1 = arith.constant 0 : i32
    return %arg0, %c0_i32, %c0_i32_0 : i32, i32, i32
  }
}

</mosaic_0001>

<bundles_post_ra>
// kernel: tpu_custom_call.1
= control target key start
LH: loop header
LB: loop body
LE: loop exit
PB: predicated region body
PF: predicated region fallthrough
CT: control target
= control target key end

     0   :  { %vm62_vm0 = vcmask 261120   ;;  %s1117_s0 = inlined_call_operand.vmem [shape: f32[10,32], index: 0, kind: input, shape index: {}]   ;;  %s1118_s1 = inlined_call_operand.vmem [shape: f32[32,32], index: 1, kind: input, shape index: {}]   ;;  %s1119_s2 = inlined_call_operand.vmem [shape: f32[1,32], index: 2, kind: input, shape index: {}]   ;;  %s1120_s3 = inlined_call_operand.vmem [shape: f32[32,16], index: 3, kind: input, shape index: {}]   ;;  %s1121_s4 = inlined_call_operand.vmem [shape: f32[1,16], index: 4, kind: input, shape index: {}]   ;;  %s1122_s5 = inlined_call_operand.vmem [shape: f32[1,16], index: 5, kind: input, shape index: {}]   ;;  %s1123_s6 = inlined_call_operand.<no memory space> [shape: f32[1,1], index: 6, kind: input, shape index: {}]   ;;  %s1124_s7 = inlined_call_operand.hbm [shape: f32[1,1,128], index: 7, kind: output, shape index: {}]  }
   0x1   :  { %v28_v0 = vld [vmem:[%s1118_s1] sm:$0xff]  ;;  %v29_v1 = vld [vmem:[%s1118_s1 + $0x8] sm:$0xff]  ;;  %v30_v2 = vld [vmem:[%s1118_s1 + $0x10] sm:$0xff] }
   0x2   :  { %v836_v3 = vpack.c.bf16 %v29_v1, %v28_v0  ;;  %v31_v4 = vld [vmem:[%s1118_s1 + $0x18] sm:$0xff]  ;;  %v40_v5 = vld [vmem:[%s1117_s0] sm:$0xff]  ;;  %v34_v8 = vld [vmem:[%s1120_s3 + $0x8] sm:$0xff] }
   0x3   :  { %v840_v6 = vpack.c.bf16 %v31_v4, %v30_v2  ;;  %745 = vmatprep.mubr.msk.f32.mxu1 %vm62_vm0, %v40_v5  ;;  %v33_v7 = vld [vmem:[%s1120_s3] sm:$0xff]  ;;  %v35_v9 = vld [vmem:[%s1120_s3 + $0x10] sm:$0xff]  ;;  %v36_v10 = vld [vmem:[%s1120_s3 + $0x18] sm:$0xff] }
   0x4   :  { %837 = vmatprep.subr.bf16.mxu1 %v836_v3  ;;  %v41_v11 = vld [vmem:[%s1117_s0 + $0x8] sm:$0xff]  ;;  %v844_v12 = vpack.c.bf16 %v34_v8, %v33_v7 }
   0x5   :  { %839 = vmatpush3.bf16.msra.mxu1 %v836_v3 }
   0x6   :  { %841 = vmatprep.subr.bf16.mxu1 %v840_v6 }
   0x9   :  { %843 = vmatpush3.bf16.msra.mxu1 %v840_v6 }
   0xa   :  { %13 = vsyncpa [#allocation4], 0  ;;  %v42_v13 = vld [vmem:[%s1117_s0 + $0x10] sm:$0xff]  ;;  %v848_v14 = vpack.c.bf16 %v36_v10, %v35_v9  ;;  %845 = vmatprep.subr.bf16.mxu1 %v844_v12  ;;  %v43_v15 = vld [vmem:[%s1117_s0 + $0x18] sm:$0xff]  ;;  %vm915_vm1 = vmmov 0   ;;  %vm488_vm2 = vcmask 130048  }
   0xb   :  { %v44_v16 = vld [vmem:[%s1117_s0 + $0x20] sm:$0xff]  ;;  %v45_v17 = vld [vmem:[%s1117_s0 + $0x28] sm:$0xff]  ;;  %v46_v18 = vld [vmem:[%s1117_s0 + $0x30] sm:$0xff]  ;;  %s917_s27 = smov [#allocation3]  }
   0xc   :  { %746 = vmatmul.mubr.msk.f32.vlgmr.msra.gmra.mrb[0].mxu1 %vm62_vm0, %v41_v11  ;;  %v47_v19 = vld [vmem:[%s1117_s0 + $0x38] sm:$0xff]  ;;  %v48_v20 = vld [vmem:[%s1117_s0 + $0x40] sm:$0xff]  ;;  %v49_v21 = vld [vmem:[%s1117_s0 + $0x48] sm:$0xff]  ;;  %s621_s28 = sshll.u32 %s917_s27, 4  ;;  %s622_s28 = int_to_ptr.vmem [resolvable:$true] %s621_s28 }
   0xd   :  { %748 = vmatprep.mubr.msk.f32.mxu1 %vm62_vm0, %v42_v13  ;;  %847 = vmatpush3.bf16.msra.mxu1 %v844_v12  ;;  %v50_v22 = vld [vmem:[%s1117_s0 + $0x50] sm:$0xff]  ;;  %v51_v23 = vld [vmem:[%s1117_s0 + $0x58] sm:$0xff]  ;;  %v52_v24 = vld [vmem:[%s1117_s0 + $0x60] sm:$0xff]  ;;  %v914_v13 = vmov 0.0|0.0   ;;  %s890_s29 = scalar_lea.vmem %s622_s28, 16  ;;  %p895_p1 = scmp.lt.s32.totalorder %s622_s28, %s622_s28 }
   0xe   :  { %849 = vmatprep.subr.bf16.mxu1 %v848_v14  ;;  %v53_v25 = vld [vmem:[%s1117_s0 + $0x68] sm:$0xff]  ;;  %v54_v26 = vld [vmem:[%s1117_s0 + $0x70] sm:$0xff]  ;;  %v55_v27 = vld [vmem:[%s1117_s0 + $0x78] sm:$0xff]  ;;  %852 = vmatprep.subr.bf16.mxu0 %v914_v13  ;;  %p891_p0 = scmp.ne.s32.totalorder %s622_s28, %s890_s29 }
   0xf   :  { %v629_v28 = vld [vmem:[%s1119_s2] ss:$0 sm:$0xff]  ;;  %vm1071_vm3 = vmpackc.low %vm488_vm2, %vm488_vm2 }
  0x10   :  { %749 = vmatmul.mubr.msk.f32.gmra.mrb[2].mxu1 %vm62_vm0, %v43_v15  ;;  %v646_v15 = vld [vmem:[%s1121_s4] ss:$0 sm:$0xff] }
  0x11   :  { %751 = vmatprep.mubr.msk.f32.mxu1 %vm62_vm0, %v44_v16  ;;  %851 = vmatpush3.bf16.msra.mxu1 %v848_v14  ;;  %v916_v14 = vmov 0.0  }
  0x12   :  { %833 = vmatprep.mubr.msk.f32.mxu0 %vm915_vm1, %v916_v14 }
  0x14   :  { %752 = vmatmul.mubr.msk.f32.gmra.mrb[4].mxu1 %vm62_vm0, %v45_v17 }
  0x15   :  { %754 = vmatprep.mubr.msk.f32.mxu1 %vm62_vm0, %v46_v18 }
  0x18   :  { %755 = vmatmul.mubr.msk.f32.gmra.mrb[6].mxu1 %vm62_vm0, %v47_v19 }
  0x19   :  { %757 = vmatprep.mubr.msk.f32.mxu1 %vm62_vm0, %v48_v20 }
  0x1c   :  { %758 = vmatmul.mubr.msk.f32.gmra.mrb[8].mxu1 %vm62_vm0, %v49_v21 }
  0x1d   :  { %760 = vmatprep.mubr.msk.f32.mxu1 %vm62_vm0, %v50_v22 }
  0x20   :  { %761 = vmatmul.mubr.msk.f32.gmra.mrb[10].mxu1 %vm62_vm0, %v51_v23 }
  0x21   :  { %763 = vmatprep.mubr.msk.f32.mxu1 %vm62_vm0, %v52_v24 }
  0x24   :  { %764 = vmatmul.mubr.msk.f32.gmra.mrb[12].mxu1 %vm62_vm0, %v53_v25 }
  0x25   :  { %766 = vmatprep.mubr.msk.f32.mxu1 %vm62_vm0, %v54_v26 }
  0x28   :  { %767 = vmatmul.mubr.msk.f32.gmra.mrb[14].mxu1 %vm62_vm0, %v55_v27 }
  0xdf   :  { %v747_v29 = vpop.f32.mrb[0].mxu1 }
  0xe0   :  { %v183_v30 = vadd.f32 %v747_v29, %v629_v28  ;;  %v177_v31 = vpop.f32.mrb[1].mxu1 }
  0xe1   :  { %v178_v32 = vadd.f32 %v629_v28, %v177_v31 }
  0xe2   :  { %v257_v35 = vmax.f32 %v183_v30, 0.0 }
  0xe3   :  { %v256_v33 = vmax.f32 %v178_v32, 0.0  ;;  %v750_v34 = vpop.f32.mrb[2].mxu1 }
  0xe4   :  { %v193_v36 = vadd.f32 %v750_v34, %v629_v28  ;;  %v187_v37 = vpop.f32.mrb[3].mxu1 }
  0xe5   :  { %v188_v38 = vadd.f32 %v629_v28, %v187_v37  ;;  %777 = vmatprep.mubr.msk.f32.mxu1 %vm62_vm0, %v256_v33 }
  0xe6   :  { %v259_v39 = vmax.f32 %v193_v36, 0.0  ;;  %778 = vmatmul.mubr.msk.f32.vlgmr.msra.gmra.mrb[16].mxu1 %vm62_vm0, %v257_v35 }
  0xe7   :  { %v258_v40 = vmax.f32 %v188_v38, 0.0  ;;  %v753_v41 = vpop.f32.mrb[4].mxu1 }
  0xe8   :  { %v203_v42 = vadd.f32 %v753_v41, %v629_v28  ;;  %v197_v43 = vpop.f32.mrb[5].mxu1 }
  0xe9   :  { %780 = vmatprep.mubr.msk.f32.mxu1 %vm62_vm0, %v258_v40  ;;  %v198_v44 = vadd.f32 %v629_v28, %v197_v43 }
  0xea   :  { %781 = vmatmul.mubr.msk.f32.gmra.mrb[18].mxu1 %vm62_vm0, %v259_v39  ;;  %v261_v45 = vmax.f32 %v203_v42, 0.0 }
  0xeb   :  { %v260_v46 = vmax.f32 %v198_v44, 0.0  ;;  %v756_v47 = vpop.f32.mrb[6].mxu1 }
  0xec   :  { %v213_v48 = vadd.f32 %v756_v47, %v629_v28  ;;  %v207_v49 = vpop.f32.mrb[7].mxu1 }
  0xed   :  { %783 = vmatprep.mubr.msk.f32.mxu1 %vm62_vm0, %v260_v46  ;;  %v208_v50 = vadd.f32 %v629_v28, %v207_v49 }
  0xee   :  { %784 = vmatmul.mubr.msk.f32.gmra.mrb[20].mxu1 %vm62_vm0, %v261_v45  ;;  %v263_v51 = vmax.f32 %v213_v48, 0.0 }
  0xef   :  { %v262_v52 = vmax.f32 %v208_v50, 0.0  ;;  %v759_v53 = vpop.f32.mrb[8].mxu1 }
  0xf0   :  { %v223_v54 = vadd.f32 %v759_v53, %v629_v28  ;;  %v217_v55 = vpop.f32.mrb[9].mxu1 }
  0xf1   :  { %786 = vmatprep.mubr.msk.f32.mxu1 %vm62_vm0, %v262_v52  ;;  %v218_v56 = vadd.f32 %v629_v28, %v217_v55 }
  0xf2   :  { %787 = vmatmul.mubr.msk.f32.gmra.mrb[22].mxu1 %vm62_vm0, %v263_v51  ;;  %v265_v57 = vmax.f32 %v223_v54, 0.0 }
  0xf3   :  { %v264_v58 = vmax.f32 %v218_v56, 0.0  ;;  %v762_v59 = vpop.f32.mrb[10].mxu1 }
  0xf4   :  { %v233_v60 = vadd.f32 %v762_v59, %v629_v28  ;;  %v227_v61 = vpop.f32.mrb[11].mxu1 }
  0xf5   :  { %789 = vmatprep.mubr.msk.f32.mxu1 %vm62_vm0, %v264_v58  ;;  %v228_v62 = vadd.f32 %v629_v28, %v227_v61 }
  0xf6   :  { %790 = vmatmul.mubr.msk.f32.gmra.mrb[24].mxu1 %vm62_vm0, %v265_v57  ;;  %v267_v63 = vmax.f32 %v233_v60, 0.0 }
  0xf7   :  { %v266_v0 = vmax.f32 %v228_v62, 0.0  ;;  %v765_v1 = vpop.f32.mrb[12].mxu1 }
  0xf8   :  { %v243_v2 = vadd.f32 %v765_v1, %v629_v28  ;;  %v237_v3 = vpop.f32.mrb[13].mxu1 }
  0xf9   :  { %792 = vmatprep.mubr.msk.f32.mxu1 %vm62_vm0, %v266_v0  ;;  %v238_v4 = vadd.f32 %v629_v28, %v237_v3 }
  0xfa   :  { %793 = vmatmul.mubr.msk.f32.gmra.mrb[26].mxu1 %vm62_vm0, %v267_v63  ;;  %v269_v5 = vmax.f32 %v243_v2, 0.0 }
  0xfb   :  { %v268_v6 = vmax.f32 %v238_v4, 0.0  ;;  %v768_v7 = vpop.f32.mrb[14].mxu1 }
  0xfc   :  { %v253_v8 = vadd.f32 %v768_v7, %v629_v28  ;;  %v247_v9 = vpop.f32.mrb[15].mxu1 }
  0xfd   :  { %795 = vmatprep.mubr.msk.f32.mxu1 %vm62_vm0, %v268_v6  ;;  %v248_v10 = vadd.f32 %v629_v28, %v247_v9  ;;  %v38_v9 = vld [vmem:[%s1122_s5] sm:$0x1]  ;;  %s894_s5 = scalar_lea.vmem %s622_s28, 32 }
  0xfe   :  { %796 = vmatmul.mubr.msk.f32.gmra.mrb[28].mxu1 %vm62_vm0, %v269_v5  ;;  %v271_v11 = vmax.f32 %v253_v8, 0.0  ;;  %p896_p2 = scmp.lt.s32.totalorder %s894_s5, %s890_s29 }
  0xff   :  { %v270_v12 = vmax.f32 %v248_v10, 0.0  ;;  %v487_v10 = vstv %s1123_s6 }
 0x100   :  { %p897_p3 = por %p896_p2, %p895_p1 }
 0x101   :  { %798 = vmatprep.mubr.msk.f32.mxu1 %vm62_vm0, %v270_v12 }
 0x102   :  { %799 = vmatmul.mubr.msk.f32.gmra.mrb[30].mxu1 %vm62_vm0, %v271_v11  ;;  %p898_p4 = pnand %p897_p3, %p891_p0 }
 0x1b9   :  { %v779_v16 = vpop.f32.mrb[16].mxu1 }
 0x1ba   :  { %v398_v17 = vadd.f32 %v779_v16, %v646_v15  ;;  %v392_v18 = vpop.f32.mrb[17].mxu1 }
 0x1bb   :  { %v393_v19 = vadd.f32 %v646_v15, %v392_v18 }
 0x1bc   :  { %v472_v20 = vmax.f32 %v398_v17, 0.0 }
 0x1bd   :  { %v471_v21 = vmax.f32 %v393_v19, 0.0  ;;  %v782_v22 = vpop.f32.mrb[18].mxu1 }
 0x1be   :  { %v408_v23 = vadd.f32 %v782_v22, %v646_v15  ;;  %v402_v24 = vpop.f32.mrb[19].mxu1 }
 0x1bf   :  { %v853_v26 = vpack.c.bf16 %v472_v20, %v471_v21  ;;  %v403_v27 = vadd.f32 %v646_v15, %v402_v24 }
 0x1c0   :  { %v474_v28 = vmax.f32 %v408_v23, 0.0 }
 0x1c1   :  { %v473_v29 = vmax.f32 %v403_v27, 0.0  ;;  %855 = vmatpush3.bf16.xpose.msk.msra.mxu0 %vm1071_vm3, %v853_v26  ;;  %v785_v30 = vpop.f32.mrb[20].mxu1 }
 0x1c2   :  { %v418_v31 = vadd.f32 %v785_v30, %v646_v15  ;;  %v412_v32 = vpop.f32.mrb[21].mxu1  ;;  %856 = vmatprep.subr.bf16.mxu0 %v914_v13 }
 0x1c3   :  { %v857_v33 = vpack.c.bf16 %v474_v28, %v473_v29  ;;  %v413_v34 = vadd.f32 %v646_v15, %v412_v32 }
 0x1c4   :  { %v476_v35 = vmax.f32 %v418_v31, 0.0 }
 0x1c5   :  { %v475_v36 = vmax.f32 %v413_v34, 0.0  ;;  %v788_v37 = vpop.f32.mrb[22].mxu1 }
 0x1c6   :  { %v428_v38 = vadd.f32 %v788_v37, %v646_v15  ;;  %v422_v39 = vpop.f32.mrb[23].mxu1 }
 0x1c7   :  { %v861_v40 = vpack.c.bf16 %v476_v35, %v475_v36  ;;  %v423_v41 = vadd.f32 %v646_v15, %v422_v39 }
 0x1c8   :  { %v478_v42 = vmax.f32 %v428_v38, 0.0 }
 0x1c9   :  { %859 = vmatpush3.bf16.xpose.msk.msra.mxu0 %vm1071_vm3, %v857_v33  ;;  %v477_v43 = vmax.f32 %v423_v41, 0.0  ;;  %v791_v44 = vpop.f32.mrb[24].mxu1 }
 0x1ca   :  { %860 = vmatprep.subr.bf16.mxu0 %v914_v13  ;;  %v438_v45 = vadd.f32 %v791_v44, %v646_v15  ;;  %v432_v46 = vpop.f32.mrb[25].mxu1 }
 0x1cb   :  { %v865_v47 = vpack.c.bf16 %v478_v42, %v477_v43  ;;  %v433_v48 = vadd.f32 %v646_v15, %v432_v46 }
 0x1cc   :  { %v480_v49 = vmax.f32 %v438_v45, 0.0 }
 0x1cd   :  { %v479_v50 = vmax.f32 %v433_v48, 0.0  ;;  %v794_v51 = vpop.f32.mrb[26].mxu1 }
 0x1ce   :  { %v448_v52 = vadd.f32 %v794_v51, %v646_v15  ;;  %v442_v53 = vpop.f32.mrb[27].mxu1 }
 0x1cf   :  { %v869_v54 = vpack.c.bf16 %v480_v49, %v479_v50  ;;  %v443_v55 = vadd.f32 %v646_v15, %v442_v53 }
 0x1d0   :  { %v482_v56 = vmax.f32 %v448_v52, 0.0 }
 0x1d1   :  { %863 = vmatpush3.bf16.xpose.msk.msra.mxu0 %vm1071_vm3, %v861_v40  ;;  %v481_v57 = vmax.f32 %v443_v55, 0.0  ;;  %v797_v58 = vpop.f32.mrb[28].mxu1 }
 0x1d2   :  { %864 = vmatprep.subr.bf16.mxu0 %v914_v13  ;;  %v458_v59 = vadd.f32 %v797_v58, %v646_v15  ;;  %v452_v60 = vpop.f32.mrb[29].mxu1 }
 0x1d3   :  { %v873_v61 = vpack.c.bf16 %v482_v56, %v481_v57  ;;  %v453_v62 = vadd.f32 %v646_v15, %v452_v60 }
 0x1d4   :  { %v484_v63 = vmax.f32 %v458_v59, 0.0 }
 0x1d5   :  { %v483_v0 = vmax.f32 %v453_v62, 0.0  ;;  %v800_v1 = vpop.f32.mrb[30].mxu1 }
 0x1d6   :  { %v468_v2 = vadd.f32 %v800_v1, %v646_v15  ;;  %v462_v3 = vpop.f32.mrb[31].mxu1 }
 0x1d7   :  { %v877_v4 = vpack.c.bf16 %v484_v63, %v483_v0  ;;  %v463_v5 = vadd.f32 %v646_v15, %v462_v3 }
 0x1d8   :  { %v486_v6 = vmax.f32 %v468_v2, 0.0 }
 0x1d9   :  { %867 = vmatpush3.bf16.xpose.msk.msra.mxu0 %vm1071_vm3, %v865_v47  ;;  %v485_v7 = vmax.f32 %v463_v5, 0.0 }
 0x1da   :  { %868 = vmatprep.subr.bf16.mxu0 %v914_v13 }
 0x1db   :  { %v881_v8 = vpack.c.bf16 %v486_v6, %v485_v7 }
 0x1e1   :  { %871 = vmatpush3.bf16.xpose.msk.msra.mxu0 %vm1071_vm3, %v869_v54 }
 0x1e2   :  { %872 = vmatprep.subr.bf16.mxu0 %v914_v13 }
 0x1e9   :  { %875 = vmatpush3.bf16.xpose.msk.msra.mxu0 %vm1071_vm3, %v873_v61 }
 0x1ea   :  { %876 = vmatprep.subr.bf16.mxu0 %v914_v13 }
 0x1f1   :  { %879 = vmatpush3.bf16.xpose.msk.msra.mxu0 %vm1071_vm3, %v877_v4 }
 0x1f2   :  { %880 = vmatprep.subr.bf16.mxu0 %v914_v13 }
 0x1f9   :  { %883 = vmatpush3.bf16.xpose.msk.msra.mxu0 %vm1071_vm3, %v881_v8 }
 0x200   :  { %834 = vmatmul.mubr.msk.f32.vlgmr.msra.gmra.mrb[0].mxu0 %vm488_vm2, %v38_v9 }
 0x2d3   :  { %v606_v11 = vpop.f32.mrb[0].mxu0 }
 0x2d4   :  { %v607_v12 = vadd.f32 %v606_v11, %v487_v10  ;;  %v835_v14 = vpop.f32.mrb[1].mxu0 }
 0x2d6   :  { %v610_v15 = vmul.f32 0.5, %v607_v12 }
 0x2d8   :  { %888 = vtanh.f32 %v610_v15 }
 0x2e2   :  { %v889_v16 = vpop.eup %888 }
 0x2e3   :  { %v612_v13 = vadd.f32 1.0, %v889_v16 }
 0x2e5   :  { %v613_v17 = vmul.f32 0.5, %v612_v13 }
 0x2e7   :  { %614 = vst [vmem:[#allocation3] sm:$0x1] %v613_v17 }
 0x2e8   :  { %901 = shalt.err (!%p898_p4)
}
 0x2e9   :  { %s902_s8 = scalar_lea.hbm %s1124_s7, 16 }
 0x2ea   :  { %p903_p5 = scmp.ne.s32.totalorder %s1124_s7, %s902_s8  ;;  %p906_p6 = scmp.lt.u32.totalorder %s902_s8, %s1124_s7 }
 0x2ec   :  { %p908_p7 = pnand %p906_p6, %p903_p5 }
 0x2ee   :  { %911 = shalt.err (!%p908_p7)
}
 0x2ef   :  { %624 = dma.vmem_to_hbm [thread:$0]  %s622_s28, 16, %s1124_s7, [#allocation4]  }
 0x2f0   :  { %912 = dma.done.wait [#allocation4], 16  }
 0x2f1   :  { %913 = vsyncadd [#allocation4], 4294967280 }
 0x2f2   :  { %628 = vsyncpa [#allocation4], 1 }

</bundles_post_ra>
